<compile_context>
chip_gen: v5e
topology: v5e:2x2
jax: 0.10.0
libtpu: 0.0.40
codegen_flags: <defaults>
</compile_context>

<pallas_src>
import functools

import jax
import jax.numpy as jnp
from jax.experimental import pallas as pl
from jax.experimental.pallas import tpu as pltpu


# ---------------------------------------------------------------------------
# Fully fused GCN kernel (single pallas_call, everything resident in VMEM).
# ---------------------------------------------------------------------------
def _gcn_fused_kernel(x_ref, adj_ref, w1_ref, b1_ref, w2_ref, b2_ref, o_ref):
    adj = adj_ref[...]                                           # (N, N) bf16
    # Layer 1: support1 = x @ W1 + b1 ; h = relu(adj @ support1)
    s1 = jnp.dot(x_ref[...], w1_ref[...],
                 preferred_element_type=jnp.float32) + b1_ref[...]
    h = jnp.maximum(
        jnp.dot(adj, s1.astype(jnp.bfloat16),
                preferred_element_type=jnp.float32), 0.0)
    # Layer 2: support2 = h @ W2 + b2 ; out = adj @ support2
    s2 = jnp.dot(h.astype(jnp.bfloat16), w2_ref[...],
                 preferred_element_type=jnp.float32) + b2_ref[...]
    o_ref[...] = jnp.dot(adj, s2.astype(jnp.bfloat16),
                         preferred_element_type=jnp.float32).astype(o_ref.dtype)


def _gcn_fused(params, x, adj):
    n = x.shape[0]
    o_dim = params["w2"].shape[1]
    return pl.pallas_call(
        _gcn_fused_kernel,
        out_shape=jax.ShapeDtypeStruct((n, o_dim), jnp.float32),
    )(x.astype(jnp.bfloat16), adj.astype(jnp.bfloat16),
      params["w1"], params["b1"], params["w2"], params["b2"])


def _fused_fits_vmem(n, k, h, o, budget_bytes=20 * 1024 * 1024):
    need = (n * n * 2 + n * k * 2 + k * h * 2 + h * o * 2    # bf16 operands
            + 4 * (h + o)                                    # biases (f32)
            + 4 * n * (2 * h + 2 * o))                       # f32 intermediates
    return need <= budget_bytes


# ---------------------------------------------------------------------------
# Tiled fallback for graphs too large for the fused path:
# out = act(x @ w + b), f32 output block doubles as K accumulator (no scratch).
# ---------------------------------------------------------------------------
def _matmul_bias_act_kernel(x_ref, w_ref, b_ref, o_ref, *, apply_relu):
    k = pl.program_id(2)

    @pl.when(k == 0)
    def _():
        o_ref[...] = jnp.zeros_like(o_ref)

    o_ref[...] += jnp.dot(x_ref[...], w_ref[...],
                          preferred_element_type=jnp.float32)

    @pl.when(k == pl.num_programs(2) - 1)
    def _():
        out = o_ref[...] + b_ref[...]          # (tm, tn) + (1, tn)
        if apply_relu:
            out = jnp.maximum(out, 0.0)
        o_ref[...] = out


def _tiled_matmul(xp, wp, bp, *, tm, tn, tk, apply_relu):
    Mp, Kp = xp.shape
    _, Np = wp.shape
    return pl.pallas_call(
        functools.partial(_matmul_bias_act_kernel, apply_relu=apply_relu),
        out_shape=jax.ShapeDtypeStruct((Mp, Np), jnp.float32),
        grid_spec=pltpu.PrefetchScalarGridSpec(
            num_scalar_prefetch=0,
            grid=(Mp // tm, Np // tn, Kp // tk),
            in_specs=[
                pl.BlockSpec((tm, tk), lambda i, j, k: (i, k)),
                pl.BlockSpec((tk, tn), lambda i, j, k: (k, j)),
                pl.BlockSpec((1, tn), lambda i, j, k: (0, j)),
            ],
            out_specs=pl.BlockSpec((tm, tn), lambda i, j, k: (i, j)),
        ),
        compiler_params=pltpu.CompilerParams(
            dimension_semantics=("parallel", "parallel", "arbitrary"),
            vmem_limit_bytes=48 * 1024 * 1024,   # safe on v7x's 64 MiB VMEM
        ),
    )(xp, wp, bp)


def _round_up(x, m):
    return (x + m - 1) // m * m


def _pick_tile(dim, target, align):
    tile = min(target, _round_up(dim, align))
    return tile, _round_up(dim, tile)


def _gcn_tiled(params, x, adj):
    n, k_in = x.shape
    h_dim = params["w1"].shape[1]
    o_dim = params["w2"].shape[1]
    bf = jnp.bfloat16

    # Node dim is both M (rows) and K (adj contraction); 256 keeps >=2 row
    # tiles on large graphs so both v7x TensorCores get parallel work.
    t_n, n_p = _pick_tile(n, 256, 128)
    t_k, k_p = _pick_tile(k_in, 512, 128)
    t_h, h_p = _pick_tile(h_dim, 512, 128)
    t_o, o_p = _pick_tile(o_dim, 512, 128)

    # Pad + cast each operand exactly once per forward (adj in particular).
    xp = jnp.pad(x, ((0, n_p - n), (0, k_p - k_in))).astype(bf)
    adjp = jnp.pad(adj, ((0, n_p - n), (0, n_p - n))).astype(bf)
    w1p = jnp.pad(params["w1"], ((0, k_p - k_in), (0, h_p - h_dim)))
    w2p = jnp.pad(params["w2"], ((0, h_p - h_dim), (0, o_p - o_dim)))
    b1p = jnp.pad(params["b1"], ((0, 0), (0, h_p - h_dim)))
    b2p = jnp.pad(params["b2"], ((0, 0), (0, o_p - o_dim)))
    zero_h = jnp.zeros((1, h_p), jnp.float32)
    zero_o = jnp.zeros((1, o_p), jnp.float32)

    s1 = _tiled_matmul(xp, w1p, b1p, tm=t_n, tn=t_h, tk=t_k, apply_relu=False)
    h = _tiled_matmul(adjp, s1.astype(bf), zero_h,
                      tm=t_n, tn=t_h, tk=t_n, apply_relu=True)
    s2 = _tiled_matmul(h.astype(bf), w2p, b2p,
                       tm=t_n, tn=t_o, tk=t_h, apply_relu=False)
    out = _tiled_matmul(adjp, s2.astype(bf), zero_o,
                        tm=t_n, tn=t_o, tk=t_n, apply_relu=False)
    return out[:n, :o_dim]


# ---------------------------------------------------------------------------
# GCN forward:  gc2(relu(gc1(input, adj)), adj)
# ---------------------------------------------------------------------------
@jax.jit
def gcn_forward(params, x, adj):
    n, k_in = x.shape
    h_dim = params["w1"].shape[1]
    o_dim = params["w2"].shape[1]
    if _fused_fits_vmem(n, k_in, h_dim, o_dim):
        return _gcn_fused(params, x, adj)
    return _gcn_tiled(params, x, adj)


# ---------------------------------------------------------------------------
# Parameter init (nn.Linear default: U(-1/sqrt(fan_in), 1/sqrt(fan_in)));
# weights stored transposed relative to PyTorch: (in_dim, out_dim).
# ---------------------------------------------------------------------------
def init_params(key, input_dim, hidden_dim, output_dim):
    k = jax.random.split(key, 4)

    def u(kk, shape, fan_in):
        bound = 1.0 / float(fan_in) ** 0.5
        return jax.random.uniform(kk, shape, jnp.float32, -bound, bound)

    return dict(
        w1=u(k[0], (input_dim, hidden_dim), input_dim),
        b1=u(k[1], (hidden_dim,), input_dim),
        w2=u(k[2], (hidden_dim, output_dim), hidden_dim),
        b2=u(k[3], (output_dim,), hidden_dim),
    )


def prepare_params(params):
    """One-time prep: weights to bf16 (MXU-native), biases to (1, N) f32."""
    return dict(
        w1=params["w1"].astype(jnp.bfloat16),
        b1=params["b1"].reshape(1, -1).astype(jnp.float32),
        w2=params["w2"].astype(jnp.bfloat16),
        b2=params["b2"].reshape(1, -1).astype(jnp.float32),
    )


if __name__ == "__main__":
    n_nodes, input_dim, hidden_dim, output_dim = 16, 32, 64, 32

    key = jax.random.PRNGKey(0)
    kp, kx, ka = jax.random.split(key, 3)

    params = init_params(kp, input_dim, hidden_dim, output_dim)
    prepped = prepare_params(params)

    x = jax.random.normal(kx, (n_nodes, input_dim), jnp.float32)

    # Row-normalized adjacency with self-loops (typical GCN preprocessing).
    adj = (jax.random.uniform(ka, (n_nodes, n_nodes)) < 0.3).astype(jnp.float32)
    adj = adj + jnp.eye(n_nodes, dtype=jnp.float32)
    adj = adj / adj.sum(axis=-1, keepdims=True)

    out = gcn_forward(prepped, x, adj)
    jax.block_until_ready(out)
    assert out.shape == (n_nodes, output_dim)

    # Reference 1: mimic the kernel's bf16 operand / f32 accumulate matmuls.
    def mm_bf(a, b):
        return jnp.dot(a.astype(jnp.bfloat16), b.astype(jnp.bfloat16),
                       preferred_element_type=jnp.float32)

    s1 = mm_bf(x, params["w1"]) + params["b1"]
    h_bf = jnp.maximum(mm_bf(adj, s1), 0.0)
    s2 = mm_bf(h_bf, params["w2"]) + params["b2"]
    ref_bf16 = mm_bf(adj, s2)
    assert jnp.allclose(out, ref_bf16, atol=1e-2, rtol=1e-2), \
        float(jnp.max(jnp.abs(out - ref_bf16)))

    # Reference 2: pure f32 (original PyTorch semantics); bf16 MXU inputs
    # loosen the tolerance.
    h_ref = jnp.maximum(adj @ (x @ params["w1"] + params["b1"]), 0.0)
    ref_f32 = adj @ (h_ref @ params["w2"] + params["b2"])
    assert jnp.allclose(out, ref_f32, atol=5e-2, rtol=5e-2), \
        float(jnp.max(jnp.abs(out - ref_f32)))

    print("KERNEL_OK")
</pallas_src>

<mosaic_0001>
module attributes {stable_mosaic.version = 11 : i64} {
  func.func @_gcn_fused_kernel(%arg0: memref<16x32xbf16, #tpu.memory_space<vmem>>, %arg1: memref<16x16xbf16, #tpu.memory_space<vmem>>, %arg2: memref<32x64xbf16, #tpu.memory_space<vmem>>, %arg3: memref<1x64xf32, #tpu.memory_space<vmem>>, %arg4: memref<64x32xbf16, #tpu.memory_space<vmem>>, %arg5: memref<1x32xf32, #tpu.memory_space<vmem>>, %arg6: memref<16x32xf32, #tpu.memory_space<vmem>>) attributes {dimension_semantics = [], scalar_prefetch = 0 : i64, scratch_operands = 0 : i64, tpu.core_type = #tpu.core_type<tc>} {
    %c0 = arith.constant 0 : index
    %c0_0 = arith.constant 0 : index
    %0 = vector.load %arg1[%c0, %c0_0] : memref<16x16xbf16, #tpu.memory_space<vmem>>, vector<16x16xbf16>
    %c0_1 = arith.constant 0 : index
    %c0_2 = arith.constant 0 : index
    %1 = vector.load %arg0[%c0_1, %c0_2] : memref<16x32xbf16, #tpu.memory_space<vmem>>, vector<16x32xbf16>
    %c0_3 = arith.constant 0 : index
    %c0_4 = arith.constant 0 : index
    %2 = vector.load %arg2[%c0_3, %c0_4] : memref<32x64xbf16, #tpu.memory_space<vmem>>, vector<32x64xbf16>
    %cst = arith.constant dense<0.000000e+00> : vector<16x64xf32>
    %3 = tpu.matmul %1, %2, %cst {dimension_numbers = #tpu.dot_dimension_numbers<[1], [0], [0], [1], [0, 0, 1, 1], [], []>} : vector<16x32xbf16>, vector<32x64xbf16>, vector<16x64xf32> -> vector<16x64xf32>
    %c0_5 = arith.constant 0 : index
    %c0_6 = arith.constant 0 : index
    %4 = vector.load %arg3[%c0_5, %c0_6] : memref<1x64xf32, #tpu.memory_space<vmem>>, vector<1x64xf32>
    %5 = vector.broadcast %4 : vector<1x64xf32> to vector<16x64xf32>
    %6 = arith.addf %3, %5 : vector<16x64xf32>
    %7 = arith.truncf %6 : vector<16x64xf32> to vector<16x64xbf16>
    %cst_7 = arith.constant dense<0.000000e+00> : vector<16x64xf32>
    %8 = tpu.matmul %0, %7, %cst_7 {dimension_numbers = #tpu.dot_dimension_numbers<[1], [0], [0], [1], [0, 0, 1, 1], [], []>} : vector<16x16xbf16>, vector<16x64xbf16>, vector<16x64xf32> -> vector<16x64xf32>
    %cst_8 = arith.constant 0.000000e+00 : f32
    %9 = vector.broadcast %cst_8 : f32 to vector<16x64xf32>
    %10 = arith.maximumf %8, %9 : vector<16x64xf32>
    %11 = arith.truncf %10 : vector<16x64xf32> to vector<16x64xbf16>
    %c0_9 = arith.constant 0 : index
    %c0_10 = arith.constant 0 : index
    %12 = vector.load %arg4[%c0_9, %c0_10] : memref<64x32xbf16, #tpu.memory_space<vmem>>, vector<64x32xbf16>
    %cst_11 = arith.constant dense<0.000000e+00> : vector<16x32xf32>
    %13 = tpu.matmul %11, %12, %cst_11 {dimension_numbers = #tpu.dot_dimension_numbers<[1], [0], [0], [1], [0, 0, 1, 1], [], []>} : vector<16x64xbf16>, vector<64x32xbf16>, vector<16x32xf32> -> vector<16x32xf32>
    %c0_12 = arith.constant 0 : index
    %c0_13 = arith.constant 0 : index
    %14 = vector.load %arg5[%c0_12, %c0_13] : memref<1x32xf32, #tpu.memory_space<vmem>>, vector<1x32xf32>
    %15 = vector.broadcast %14 : vector<1x32xf32> to vector<16x32xf32>
    %16 = arith.addf %13, %15 : vector<16x32xf32>
    %17 = arith.truncf %16 : vector<16x32xf32> to vector<16x32xbf16>
    %cst_14 = arith.constant dense<0.000000e+00> : vector<16x32xf32>
    %18 = tpu.matmul %0, %17, %cst_14 {dimension_numbers = #tpu.dot_dimension_numbers<[1], [0], [0], [1], [0, 0, 1, 1], [], []>} : vector<16x16xbf16>, vector<16x32xbf16>, vector<16x32xf32> -> vector<16x32xf32>
    %c0_15 = arith.constant 0 : index
    %c0_16 = arith.constant 0 : index
    %19 = vector.load %arg6[%c0_15, %c0_16] : memref<16x32xf32, #tpu.memory_space<vmem>>, vector<16x32xf32>
    tpu.vector_store %arg6[%c0_15, %c0_16], %18 {strides = array<i32>} : memref<16x32xf32, #tpu.memory_space<vmem>>, vector<16x32xf32>,
    return
  }
}

</mosaic_0001>

<bundles_post_ra>
// kernel: gcn_forward.1
= control target key start
LH: loop header
LB: loop body
LE: loop exit
PB: predicated region body
PF: predicated region fallthrough
CT: control target
= control target key end

     0   :  { %s339_s0 = inlined_call_operand.vmem [shape: bf16[16,32], index: 0, kind: input, shape index: {}]   ;;  %s340_s1 = inlined_call_operand.vmem [shape: bf16[16,16], index: 1, kind: input, shape index: {}]   ;;  %s341_s2 = inlined_call_operand.vmem [shape: bf16[32,64], index: 2, kind: input, shape index: {}]   ;;  %s342_s3 = inlined_call_operand.vmem [shape: f32[1,64], index: 3, kind: input, shape index: {}]   ;;  %s343_s4 = inlined_call_operand.vmem [shape: bf16[64,32], index: 4, kind: input, shape index: {}]   ;;  %s344_s5 = inlined_call_operand.vmem [shape: f32[1,32], index: 5, kind: input, shape index: {}]   ;;  %s345_s6 = inlined_call_operand.hbm [shape: f32[16,32], index: 6, kind: output, shape index: {}]  }
   0x1   :  { %v227_v0 = vld [vmem:[%s341_s2 + $0x8] sm:$0xff]  ;;  %v226_v1 = vld [vmem:[%s341_s2] sm:$0xff] }
   0x2   :  { %64 = vmatpush.bf16.msra.mxu0 %v227_v0 }
   0x3   :  { %11 = vsyncpa [#allocation3], 0  ;;  %v225_v2 = vld [vmem:[%s339_s0] sm:$0xff]  ;;  %vm54_vm0 = vcmask 261120   ;;  %v231_v3 = vld [vmem:[%s343_s4 + $0x18] sm:$0xff]  ;;  %vm78_vm1 = vcmask 130048  }
   0x4   :  { %143 = vmatpush.bf16.msra.mxu2 %v231_v3  ;;  %v235_v5 = vld [vmem:[%s342_s3] ss:$0 sm:$0xff]  ;;  %v230_v11 = vld [vmem:[%s343_s4 + $0x10] sm:$0xff]  ;;  %v229_v12 = vld [vmem:[%s343_s4 + $0x8] sm:$0xff]  ;;  %vm135_vm2 = vcmask 523264   ;;  %s176_s16 = sshll.u32 %s345_s6, 4  ;;  %s177_s16 = int_to_ptr.hbm [resolvable:$true] %s176_s16 }
   0x5   :  { %v224_v10 = vld [vmem:[%s340_s1] sm:$0xff]  ;;  %s265_s17 = smov 8  }
   0x6   :  { %65 = vmatpush.bf16.msra.mxu0 %v226_v1  ;;  %v228_v13 = vld [vmem:[%s343_s4] sm:$0xff]  ;;  %s263_s4 = smov [#allocation2]  }
   0x7   :  { %v236_v20 = vld [vmem:[%s344_s5] ss:$0 sm:$0xff]  ;;  %s174_s13 = sshll.u32 %s263_s4, 4  ;;  %s264_s5 = smov 128   ;;  %s175_s13 = int_to_ptr.vmem [resolvable:$true] %s174_s13 }
   0x8   :  { %144 = vmatpush.bf16.msra.mxu2 %v230_v11 }
   0x9   :  { %200 = vmatmul.msk.bf16.vlgmr.msra.gmra.mxu0 %vm54_vm0, %v225_v2 }
   0xc   :  { %145 = vmatpush.bf16.msra.mxu2 %v229_v12 }
  0x10   :  { %146 = vmatpush.bf16.msra.mxu2 %v228_v13 }
  0x86   :  { %v67_v4 = vpop.f32.mrf.mxu0 }
  0x87   :  { %v68_v7 = vadd.f32 %v235_v5, %v67_v4 }
  0x8e   :  { %v69_v6 = vpop.f32.mrf.mxu0 }
  0x8f   :  { %v70_v8 = vadd.f32 %v235_v5, %v69_v6 }
  0x91   :  { %v72_v9 = vpack.c.bf16 %v70_v8, %v68_v7 }
  0x93   :  { %89 = vmatpush.bf16.msra.mxu1 %v72_v9 }
  0x96   :  { %205 = vmatmul.msk.bf16.vlgmr.msra.gmra.mxu1 %vm78_vm1, %v224_v10 }
 0x113   :  { %v91_v14 = vpop.f32.mrf.mxu1 }
 0x114   :  { %v96_v16 = vmax.f32 %v91_v14, 0.0 }
 0x11b   :  { %v93_v15 = vpop.f32.mrf.mxu1 }
 0x11c   :  { %v97_v17 = vmax.f32 %v93_v15, 0.0 }
 0x11e   :  { %v98_v18 = vpack.c.bf16 %v97_v17, %v96_v16 }
 0x120   :  { %222 = vmatmul.msk.bf16.vlgmr.msra.gmra.mxu2 %vm135_vm2, %v98_v18 }
 0x1a3   :  { %v148_v19 = vpop.f32.mrf.mxu2 }
 0x1a4   :  { %v149_v22 = vadd.f32 %v236_v20, %v148_v19 }
 0x1ab   :  { %v150_v21 = vpop.f32.mrf.mxu2 }
 0x1ac   :  { %v151_v23 = vadd.f32 %v236_v20, %v150_v21 }
 0x1ae   :  { %v153_v24 = vpack.c.bf16 %v151_v23, %v149_v22 }
 0x1b0   :  { %161 = vmatpush.bf16.msra.mxu3 %v153_v24 }
 0x1b3   :  { %223 = vmatmul.msk.bf16.vlgmr.msra.gmra.mxu3 %vm78_vm1, %v224_v10 }
 0x236   :  { %v163_v25 = vpop.f32.mrf.mxu3 }
 0x237   :  { %168 = vst.msk [vmem:[#allocation2] sm:$0xff] %vm54_vm0, %v163_v25 }
 0x23e   :  { %v165_v26 = vpop.f32.mrf.mxu3 }
 0x23f   :  { %169 = vst.msk [vmem:[#allocation2 + $0x8] sm:$0xff] %vm54_vm0, %v165_v26 }
 0x240   :  { %182 = dma.vmem_to_hbm [thread:$0]  %s175_s13, 256, %s177_s16, [#allocation3], %s264_s5, %s264_s5, %s265_s17  }
 0x241   :  { %261 = dma.done.wait [#allocation3], 256  }
 0x242   :  { %262 = vsyncadd [#allocation3], 4294967040 }
 0x243   :  { %187 = vsyncpa [#allocation3], 1 }

</bundles_post_ra>
